<compile_context>
chip_gen: v7x
topology: tpu7x:2x2x1
jax: 0.10.0
libtpu: 0.0.40
codegen_flags: <defaults>
</compile_context>

<pallas_src>
import functools

import jax
import jax.numpy as jnp
from jax.experimental import pallas as pl
from jax.experimental.pallas import tpu as pltpu


def _apply_activation(x, active: str):
    if active == "NULL":
        return x
    if active == "ReLU":
        return jnp.maximum(x, 0.0)
    if active == "Tanh":
        return jnp.tanh(x)
    if active == "Sigmoid":
        return jax.nn.sigmoid(x)
    # TODO(synk): other torch.nn activations can be added here as needed.
    raise ValueError(f"unsupported activation: {active}")


def _kallisto_kernel(idx_ref, emb_ref, out_ref, *, active: str, vocab: int):
    # idx_ref: (1, N) int32 in VMEM   (flattened indices, lane-dense)
    # emb_ref: (V, 1) f32  in VMEM   (embedding column, V on sublanes)
    # out_ref: (1, N) f32  in VMEM   (lane-dense output)
    idx = idx_ref[...]                     # (1, N)
    emb = emb_ref[...]                     # (V, 1)
    n = idx.shape[1]

    # Gather via one-hot compare/select over a single (V, N) tile:
    # V on sublanes, N on lanes.  One VALU select per element replaces the
    # previous bool->f32 cast + multiply.
    # TODO(synk): since V <= 128, a jnp.take lane gather (XLU permute) could
    # replace the whole compare/select/reduce if Mosaic accepts that lowering.
    viota = jax.lax.broadcasted_iota(jnp.int32, (vocab, n), 0)    # (V, N)
    onehot = viota == idx                                         # (V, N)
    sel = jnp.where(onehot, emb, 0.0)                             # (V, N)
    gathered = jnp.sum(sel, axis=0, keepdims=True)                # (1, N)

    act = _apply_activation(gathered, active)

    # Global normalizer: reciprocal (EUP slot, nearly free) + one Newton
    # refinement for full f32 accuracy, then a single vector multiply.
    total = jnp.sum(act, keepdims=True)                           # (1, 1)
    inv = pl.reciprocal(total, approx=True)
    inv = inv * (2.0 - total * inv)                                # Newton step
    out_ref[...] = act * inv


def kallisto_a(x_idx, emb_weight, active: str = "ReLU"):
    """x_idx: (B, S) integer indices; emb_weight: (V, 1) f32 embedding table."""
    B, S = x_idx.shape
    N = B * S
    V = emb_weight.shape[0]

    idx_row = x_idx.reshape(1, N).astype(jnp.int32)          # lane-dense idx
    emb_col = emb_weight.reshape(V, 1).astype(jnp.float32)   # (V, 1) column

    kernel = functools.partial(_kallisto_kernel, active=active, vocab=V)
    # TODO(synk): for large N = B*S, restructure into a grid tiled over N with
    # a two-pass normalize (accumulate partial sums, then scale); at these
    # sizes a single exact-shape block is optimal and needs no pad masking.
    out = pl.pallas_call(
        kernel,
        out_shape=jax.ShapeDtypeStruct((1, N), jnp.float32),
        grid_spec=pltpu.PrefetchScalarGridSpec(
            num_scalar_prefetch=0,
            grid=(1,),
            in_specs=[
                pl.BlockSpec((1, N), lambda i: (0, 0)),
                pl.BlockSpec((V, 1), lambda i: (0, 0)),
            ],
            out_specs=pl.BlockSpec((1, N), lambda i: (0, 0)),
        ),
        compiler_params=pltpu.CompilerParams(
            dimension_semantics=("arbitrary",)
        ),
    )(idx_row, emb_col)
    # Restore the PyTorch (B, S, embed_dim=1) output shape outside the kernel.
    return out.reshape(B, S, 1)


def _reference(x_idx, emb_weight, active):
    y = emb_weight[x_idx]                 # (B, S, 1)
    y = _apply_activation(y, active)
    return y / jnp.sum(y)


if __name__ == "__main__":
    key = jax.random.PRNGKey(0)
    k_idx, k_emb = jax.random.split(key)

    input_size = 16   # vocab size
    active = "ReLU"
    B, S = 2, 8

    # Deterministic parameter init (nn.Embedding ~ N(0,1); padding row zeroed).
    emb_weight = jax.random.normal(k_emb, (input_size, 1), dtype=jnp.float32)
    emb_weight = emb_weight.at[input_size - 1].set(0.0)

    # Integer index input, values in [0, input_size).
    x = jax.random.randint(k_idx, (B, S), 0, input_size, dtype=jnp.int32)

    out = kallisto_a(x, emb_weight, active)
    out = jax.block_until_ready(out)

    ref = _reference(x, emb_weight, active)
    assert out.shape == (B, S, 1), out.shape
    assert jnp.allclose(out, ref, atol=1e-5, rtol=1e-4), (out, ref)

    print("KERNEL_OK")
</pallas_src>

<mosaic_0001>
module attributes {stable_mosaic.version = 11 : i64} {
  func.func @_kallisto_kernel(%arg0: i32, %arg1: memref<1x16xi32, #tpu.memory_space<vmem>>, %arg2: memref<16x1xf32, #tpu.memory_space<vmem>>, %arg3: memref<1x16xf32, #tpu.memory_space<vmem>>) attributes {dimension_semantics = [#tpu.dimension_semantics<arbitrary>], iteration_bounds = array<i64: 1>, scalar_prefetch = 0 : i64, scratch_operands = 0 : i64, tpu.core_type = #tpu.core_type<tc>, window_params = [{pipeline_mode = #tpu.pipeline_mode<synchronous>, transform_indices = @transform_0, window_bounds = array<i64: 1, 16>}, {pipeline_mode = #tpu.pipeline_mode<synchronous>, transform_indices = @transform_1, window_bounds = array<i64: 16, 1>}, {pipeline_mode = #tpu.pipeline_mode<synchronous>, transform_indices = @transform_2, window_bounds = array<i64: 1, 16>}]} {
    %c0 = arith.constant 0 : index
    %c0_0 = arith.constant 0 : index
    %0 = vector.load %arg1[%c0, %c0_0] : memref<1x16xi32, #tpu.memory_space<vmem>>, vector<1x16xi32>
    %c0_1 = arith.constant 0 : index
    %c0_2 = arith.constant 0 : index
    %1 = vector.load %arg2[%c0_1, %c0_2] : memref<16x1xf32, #tpu.memory_space<vmem>>, vector<16x1xf32>
    %2 = tpu.iota {dimensions = array<i32: 0>} : vector<16x16xi32>
    %3 = vector.broadcast %0 : vector<1x16xi32> to vector<16x16xi32>
    %4 = arith.cmpi eq, %2, %3 : vector<16x16xi32>
    %cst = arith.constant 0.000000e+00 : f32
    %5 = vector.shape_cast %1 : vector<16x1xf32> to vector<16x1xf32>
    %6 = vector.broadcast %5 : vector<16x1xf32> to vector<16x16xf32>
    %7 = vector.broadcast %cst : f32 to vector<16x16xf32>
    %8 = arith.select %4, %6, %7 : vector<16x16xi1>, vector<16x16xf32>
    %cst_3 = arith.constant dense<0.000000e+00> : vector<16xf32>
    %9 = vector.multi_reduction <add>, %8, %cst_3 [0] : vector<16x16xf32> to vector<16xf32>
    %10 = vector.shape_cast %9 : vector<16xf32> to vector<1x16xf32>
    %cst_4 = arith.constant 0.000000e+00 : f32
    %11 = vector.broadcast %cst_4 : f32 to vector<1x16xf32>
    %12 = arith.maximumf %10, %11 : vector<1x16xf32>
    %13 = vector.shape_cast %12 : vector<1x16xf32> to vector<1x1x16xf32>
    %cst_5 = arith.constant dense<0.000000e+00> : vector<1xf32>
    %14 = vector.multi_reduction <add>, %13, %cst_5 [1, 2] : vector<1x1x16xf32> to vector<1xf32>
    %15 = vector.shape_cast %14 : vector<1xf32> to vector<1x1x1xf32>
    %16 = vector.extract %15[0, 0, 0] : f32 from vector<1x1x1xf32>
    %17 = vector.broadcast %16 : f32 to vector<1x1xf32>
    %18 = tpu.reciprocal %17 {approx = true} : vector<1x1xf32> -> vector<1x1xf32>
    %19 = arith.mulf %17, %18 : vector<1x1xf32>
    %cst_6 = arith.constant 2.000000e+00 : f32
    %20 = vector.broadcast %cst_6 : f32 to vector<1x1xf32>
    %21 = arith.subf %20, %19 : vector<1x1xf32>
    %22 = arith.mulf %18, %21 : vector<1x1xf32>
    %23 = vector.broadcast %22 : vector<1x1xf32> to vector<1x16xf32>
    %24 = arith.mulf %12, %23 : vector<1x16xf32>
    %c0_7 = arith.constant 0 : index
    %c0_8 = arith.constant 0 : index
    %25 = vector.load %arg3[%c0_7, %c0_8] : memref<1x16xf32, #tpu.memory_space<vmem>>, vector<1x16xf32>
    tpu.vector_store %arg3[%c0_7, %c0_8], %24 {strides = array<i32>} : memref<1x16xf32, #tpu.memory_space<vmem>>, vector<1x16xf32>,
    return
  }
  func.func @transform_0(%arg0: i32) -> (i32, i32) {
    %c0_i32 = arith.constant 0 : i32
    %c0_i32_0 = arith.constant 0 : i32
    %c0_i32_1 = arith.constant 0 : i32
    return %c0_i32, %c0_i32_0 : i32, i32
  }
  func.func @transform_1(%arg0: i32) -> (i32, i32) {
    %c0_i32 = arith.constant 0 : i32
    %c0_i32_0 = arith.constant 0 : i32
    %c0_i32_1 = arith.constant 0 : i32
    return %c0_i32, %c0_i32_0 : i32, i32
  }
  func.func @transform_2(%arg0: i32) -> (i32, i32) {
    %c0_i32 = arith.constant 0 : i32
    %c0_i32_0 = arith.constant 0 : i32
    %c0_i32_1 = arith.constant 0 : i32
    return %c0_i32, %c0_i32_0 : i32, i32
  }
}

</mosaic_0001>

<bundles_post_ra>
// kernel: tpu_custom_call.1
= control target key start
LH: loop header
LB: loop body
LE: loop exit
PB: predicated region body
PF: predicated region fallthrough
CT: control target
= control target key end

     0   :  { %v111_v1 = vmov 0   ;;  %s151_s0 = inlined_call_operand.vmem [shape: s32[1,16], index: 0, kind: input, shape index: {}]   ;;  %s152_s1 = inlined_call_operand.vmem [shape: f32[16,1], index: 1, kind: input, shape index: {}]   ;;  %s153_s2 = inlined_call_operand.hbm [shape: f32[1,16], index: 2, kind: output, shape index: {}]  }
   0x1   :  { %v13_v0 = vld [vmem:[%s152_s1] sm:$0xff]  ;;  %84 = vset.pattern.permute.xlu0 %v111_v1 }
   0x2   :  { %7 = vsyncpa [#allocation3], 0  ;;  %26 = vperm.xlu0 %84, %v13_v0   ;;  %v14_v2 = vld [vmem:[%s152_s1 + $0x8] sm:$0xff]  ;;  %v15_v3 = vlaneseq  ;;  %v79_v5 = vld [vmem:[%s151_s0] ss:$0 sm:$0xff]  ;;  %vm36_vm2 = vcmask 130048  }
   0x3   :  { %vm47_vm3 = vcmask 122880   ;;  %s112_s1 = smov [#allocation2]  }
   0x4   :  { %v16_v4 = vshrl.u32 %v15_v3, 7  ;;  %s71_s15 = sshll.u32 %s112_s1, 4  ;;  %s72_s15 = int_to_ptr.vmem [resolvable:$true] %s71_s15 }
   0x5   :  { %s87_s16 = scalar_lea.vmem %s72_s15, 16  ;;  %s91_s17 = scalar_lea.vmem %s72_s15, 32 }
   0x6   :  { %31 = vperm.xlu0 %84, %v14_v2   ;;  %v17_v6 = vadd.s32 8, %v16_v4  ;;  %vm22_vm0 = vcmp.eq.s32.totalorder %v16_v4, %v79_v5  ;;  %p88_p0 = scmp.ne.s32.totalorder %s72_s15, %s87_s16  ;;  %p92_p1 = scmp.lt.s32.totalorder %s72_s15, %s72_s15 }
   0x7   :  { %p93_p2 = scmp.lt.s32.totalorder %s91_s17, %s87_s16 }
   0x8   :  { %vm23_vm1 = vcmp.eq.s32.totalorder %v17_v6, %v79_v5 }
   0x9   :  { %p94_p3 = por %p93_p2, %p92_p1 }
   0xb   :  { %p95_p4 = pnand %p94_p3, %p88_p0 }
  0x81   :  { %v27_v7 = vpop.permute.xlu0 %26 }
  0x82   :  { %v34_v8 = vsel %vm22_vm0, %v27_v7, 0.0 }
  0x83   :  { %v37_v11 = vsel %vm36_vm2, %v34_v8, 0.0 }
  0x85   :  { %v32_v9 = vpop.permute.xlu0 %31 }
  0x86   :  { %v35_v10 = vsel %vm23_vm1, %v32_v9, 0.0 }
  0x87   :  { %v38_v12 = vsel %vm36_vm2, %v35_v10, 0.0 }
  0x88   :  { %v39_v13 = vadd.f32 %v38_v12, %v37_v11 }
  0x8a   :  { %v40_v14 = vrot.slane %v39_v13, 4 }
  0x8c   :  { %v41_v15 = vadd.f32 %v40_v14, %v39_v13 }
  0x8e   :  { %v42_v16 = vrot.slane %v41_v15, 2 }
  0x90   :  { %v43_v17 = vadd.f32 %v42_v16, %v41_v15 }
  0x92   :  { %v44_v18 = vrot.slane %v43_v17, 1 }
  0x94   :  { %v45_v19 = vadd.f32 %v44_v18, %v43_v17 }
  0x96   :  { %v46_v20 = vmax.f32 %v45_v19, 0.0 }
  0x98   :  { %v48_v21 = vsel %vm47_vm3, %v46_v20, 0.0 }
  0x99   :  { %49 = vadd.xlane.f32.xlu1 %v48_v21 }
 0x126   :  { %v50_v22 = vpop.xlane.xlu1 %49 }
 0x127   :  { %v51_v23 = vrot.slane %v50_v22, 4 }
 0x129   :  { %v52_v24 = vadd.f32 %v51_v23, %v50_v22 }
 0x12b   :  { %v53_v25 = vrot.slane %v52_v24, 2 }
 0x12d   :  { %v54_v26 = vadd.f32 %v53_v25, %v52_v24 }
 0x12f   :  { %v55_v27 = vrot.slane %v54_v26, 1 }
 0x131   :  { %v56_v28 = vadd.f32 %v55_v27, %v54_v26 }
 0x133   :  { %80 = vpush %v56_v28 }
 0x164   :  { %s81_s0 = spop %80 }
 0x165   :  { %v58_v29 = vstv %s81_s0 }
 0x166   :  { %85 = vrcp.f32 %v58_v29 }
 0x170   :  { %v86_v30 = vpop.eup %85 }
 0x171   :  { %v60_v31 = vmul.f32 %v86_v30, %v58_v29 }
 0x173   :  { %v61_v32 = vsub.f32 2.0, %v60_v31 }
 0x175   :  { %v62_v33 = vmul.f32 %v86_v30, %v61_v32 }
 0x177   :  { %v63_v34 = vmul.f32 %v62_v33, %v46_v20 }
 0x179   :  { %64 = vst.msk [vmem:[#allocation2] sm:$0x1] %vm47_vm3, %v63_v34 }
 0x17a   :  { %98 = shalt.err (!%p95_p4)
}
 0x17b   :  { %s99_s20 = scalar_lea.hbm %s153_s2, 16 }
 0x17c   :  { %p100_p5 = scmp.ne.s32.totalorder %s153_s2, %s99_s20  ;;  %p103_p6 = scmp.lt.u32.totalorder %s99_s20, %s153_s2 }
 0x17e   :  { %p105_p7 = pnand %p103_p6, %p100_p5 }
 0x180   :  { %108 = shalt.err (!%p105_p7)
}
 0x181   :  { %74 = dma.vmem_to_hbm [thread:$0]  %s72_s15, 16, %s153_s2, [#allocation3]  }
 0x182   :  { %109 = dma.done.wait [#allocation3], 16  }
 0x183   :  { %110 = vsyncadd [#allocation3], 4294967280 }
 0x184   :  { %78 = vsyncpa [#allocation3], 1 }

</bundles_post_ra>
